<compile_context>
chip_gen: v5e
topology: v5e:2x2
jax: 0.10.0
libtpu: 0.0.40
codegen_flags: <defaults>
</compile_context>

<pallas_src>
import jax
import jax.numpy as jnp
from jax.experimental import pallas as pl
from jax.experimental.pallas import tpu as pltpu


def _round_up(n, m):
    return ((n + m - 1) // m) * m


def _tpu_budgets():
    """Returns (per-x-block byte budget, vmem_limit_bytes), generation-aware."""
    kind = ""
    try:
        kind = jax.devices()[0].device_kind.lower()
    except Exception:
        pass
    if "v7" in kind or "7x" in kind:
        # v7x: 64 MiB physical VMEM -> 2 x-buffers of ~6 MiB + small tables.
        return 6 * 1024 * 1024, 40 * 1024 * 1024
    # v5e / v6e: 128 MiB physical VMEM -> bigger blocks and limit.
    return 8 * 1024 * 1024, 64 * 1024 * 1024


def _make_kernel(hw, hw_tile, tb, c, need_mask):
    inv_hw = 1.0 / float(hw)      # single scale at finalize
    rem = hw % hw_tile            # static; > 0 iff need_mask

    def kernel(x_ref, w1_ref, b1_ref, w2_ref, b2_ref, o_ref, acc_ref):
        k = pl.program_id(1)
        n_k = pl.num_programs(1)

        @pl.when(k == 0)
        def _init():
            acc_ref[...] = jnp.zeros_like(acc_ref)

        def _accumulate(mask_tail):
            xt = x_ref[...].astype(jnp.float32)              # (tb*c, hw_tile)
            if mask_tail:
                # Only the last HW tile can run past H*W; zero those lanes.
                col = jax.lax.broadcasted_iota(jnp.int32, xt.shape, 1)
                xt = jnp.where(col < rem, xt, 0.0)
            # Row sum: VPU vreg adds + one small cross-lane reduce per step.
            acc_ref[...] += jnp.sum(xt, axis=-1, keepdims=True)

        if need_mask:
            @pl.when(k < n_k - 1)
            def _hot():                                      # unmasked hot path
                _accumulate(False)

            @pl.when(k == n_k - 1)
            def _tail():                                     # masked tail only
                _accumulate(True)
        else:
            _accumulate(False)

        @pl.when(k == n_k - 1)
        def _finalize():
            # (tb*c, 1) partial sums -> (tb, c) pooled means (tiny relayout,
            # once per batch tile).
            pooled = acc_ref[...].reshape(tb, c) * inv_hw
            h = jnp.dot(pooled, w1_ref[...],
                        preferred_element_type=jnp.float32) + b1_ref[...]
            h = jnp.maximum(h, 0.0)                          # ReLU
            s = jnp.dot(h, w2_ref[...],
                        preferred_element_type=jnp.float32) + b2_ref[...]
            o_ref[...] = jax.nn.sigmoid(s).astype(o_ref.dtype)

    return kernel


def filter_layer_forward(x, w1, b1, w2, b2, out_planes, *, hw_tile=None):
    """x: (b, c, H, W) NCHW. Returns (2, b, out_planes, 1, 1) like PyTorch."""
    b, c, H, W = x.shape
    hw = H * W
    hid = w1.shape[1]
    two_op = w2.shape[1]
    assert two_op == 2 * out_planes

    block_budget, vmem_limit = _tpu_budgets()
    itemsize = x.dtype.itemsize

    # ---- batch tiling -------------------------------------------------------
    # tb == b  -> every block first dim equals the full array dim (8-sublane
    #             rule waived).
    # tb == 8  -> x row block (8*c) and output block (8, op_p) are sublane
    #             aligned; a ragged last batch tile is handled by Pallas
    #             partial blocks (garbage rows are row-local and their output
    #             rows are masked on writeback) -- no jnp.pad of x.
    tb = b if b <= 8 else 8
    tr = tb * c                      # rows per x block (x flattened to (b*c, hw))
    # NOTE: for extremely large c the minimum (tr, 128) block may approach the
    # VMEM limit; such configs should also shrink tb (not hit by SE layers).

    # ---- spatial (reduction) tiling: lane-aligned, ~budget-sized blocks -----
    if hw_tile is None:
        lanes = block_budget // max(1, tr * itemsize)
        hw_tile = max(128, (lanes // 128) * 128)
    hw_tile = int(hw_tile)
    if hw_tile >= hw:
        hw_tile = hw                 # single full-dim block along HW
    else:
        hw_tile = max(128, (hw_tile // 128) * 128)
    need_mask = (hw % hw_tile) != 0
    grid = (pl.cdiv(b, tb), pl.cdiv(hw, hw_tile))

    # ---- pad the tiny MLP dims so the finalize store is lane-dense ----------
    hid_p = max(8, _round_up(hid, 8))
    op_p = _round_up(two_op, 128)
    f32 = jnp.float32
    w1_p = jnp.zeros((c, hid_p), f32).at[:, :hid].set(w1.astype(f32))
    b1_p = jnp.zeros((1, hid_p), f32).at[:, :hid].set(b1.astype(f32).reshape(1, hid))
    w2_p = jnp.zeros((hid_p, op_p), f32).at[:hid, :two_op].set(w2.astype(f32))
    b2_p = jnp.zeros((1, op_p), f32).at[:, :two_op].set(b2.astype(f32).reshape(1, two_op))

    # ---- glue: NCHW -> (b*c, H*W) (free contiguous reshape, no padding) -----
    x_rows = x.reshape(b * c, hw)

    kernel = _make_kernel(hw, hw_tile, tb, c, need_mask)

    out = pl.pallas_call(
        kernel,
        out_shape=jax.ShapeDtypeStruct((b, op_p), x.dtype),
        grid_spec=pltpu.PrefetchScalarGridSpec(
            num_scalar_prefetch=0,
            grid=grid,
            in_specs=[
                pl.BlockSpec((tr, hw_tile), lambda i, k: (i, k)),
                pl.BlockSpec((c, hid_p), lambda i, k: (0, 0)),
                pl.BlockSpec((1, hid_p), lambda i, k: (0, 0)),
                pl.BlockSpec((hid_p, op_p), lambda i, k: (0, 0)),
                pl.BlockSpec((1, op_p), lambda i, k: (0, 0)),
            ],
            out_specs=pl.BlockSpec((tb, op_p), lambda i, k: (i, 0)),
            scratch_shapes=[pltpu.VMEM((tr, 1), jnp.float32)],
        ),
        compiler_params=pltpu.CompilerParams(
            dimension_semantics=("parallel", "arbitrary"),
            vmem_limit_bytes=vmem_limit,
        ),
    )(x_rows, w1_p, b1_p, w2_p, b2_p)

    # glue: slice lane padding, (b, 2*OP) -> (b,2,OP,1,1) -> (2,b,OP,1,1)
    out = out[:, :two_op]
    y = out.reshape(b, 2, out_planes, 1, 1)
    return jnp.transpose(y, (1, 0, 2, 3, 4))


def _reference_forward(x, w1, b1, w2, b2, out_planes):
    # Pure-JAX reference matching the PyTorch semantics.
    b = x.shape[0]
    y = jnp.mean(x, axis=(2, 3))                                  # (b, c)
    h = jnp.maximum(y @ w1 + b1, 0.0)
    s = jax.nn.sigmoid(h @ w2 + b2)
    return jnp.transpose(s.reshape(b, 2, out_planes, 1, 1), (1, 0, 2, 3, 4))


if __name__ == "__main__":
    # Module config: in_planes=4, out_planes=32, reduction=16 -> hidden = 2
    in_planes = 4
    out_planes = 32
    reduction = 16
    hidden = max(1, out_planes // reduction)

    key = jax.random.PRNGKey(0)
    kx, k1, k2, k3, k4, kx2 = jax.random.split(key, 6)

    # Deterministic synthetic parameters, stored transposed for "x @ W".
    w1 = jax.random.normal(k1, (in_planes, hidden), dtype=jnp.float32) * 0.1
    b1 = jax.random.normal(k2, (hidden,), dtype=jnp.float32) * 0.1
    w2 = jax.random.normal(k3, (hidden, out_planes * 2), dtype=jnp.float32) * 0.1
    b2 = jax.random.normal(k4, (out_planes * 2,), dtype=jnp.float32) * 0.1

    # Case 1: B=2, 16x16. hw_tile=128 forces a 2-step HW reduction so the
    # init/accumulate/finalize accumulator path is exercised.
    B, H, W = 2, 16, 16
    x = jax.random.normal(kx, (B, in_planes, H, W), dtype=jnp.float32)
    out = jax.block_until_ready(
        filter_layer_forward(x, w1, b1, w2, b2, out_planes, hw_tile=128))
    ref = _reference_forward(x, w1, b1, w2, b2, out_planes)
    assert out.shape == (2, B, out_planes, 1, 1), out.shape
    err = float(jnp.max(jnp.abs(out - ref)))
    assert jnp.allclose(out, ref, atol=1e-5, rtol=1e-5), err

    # Case 2: ragged everywhere -- B=10 (b>8 path, ragged last batch tile)
    # and 13x13 spatial (hw=169, masked tail HW tile).
    B2, H2, W2 = 10, 13, 13
    x2 = jax.random.normal(kx2, (B2, in_planes, H2, W2), dtype=jnp.float32)
    out2 = jax.block_until_ready(
        filter_layer_forward(x2, w1, b1, w2, b2, out_planes, hw_tile=128))
    ref2 = _reference_forward(x2, w1, b1, w2, b2, out_planes)
    assert out2.shape == (2, B2, out_planes, 1, 1), out2.shape
    err2 = float(jnp.max(jnp.abs(out2 - ref2)))
    assert jnp.allclose(out2, ref2, atol=1e-5, rtol=1e-5), err2

    print("KERNEL_OK")
</pallas_src>

<mosaic_0001>
module attributes {stable_mosaic.version = 11 : i64} {
  func.func @kernel(%arg0: i32, %arg1: i32, %arg2: memref<8x128xf32, #tpu.memory_space<vmem>>, %arg3: memref<4x8xf32, #tpu.memory_space<vmem>>, %arg4: memref<1x8xf32, #tpu.memory_space<vmem>>, %arg5: memref<8x128xf32, #tpu.memory_space<vmem>>, %arg6: memref<1x128xf32, #tpu.memory_space<vmem>>, %arg7: memref<2x128xf32, #tpu.memory_space<vmem>>, %arg8: memref<8x1xf32, #tpu.memory_space<vmem>>) attributes {dimension_semantics = [#tpu.dimension_semantics<parallel>, #tpu.dimension_semantics<arbitrary>], iteration_bounds = array<i64: 1, 2>, scalar_prefetch = 0 : i64, scratch_operands = 1 : i64, tpu.core_type = #tpu.core_type<tc>, window_params = [{transform_indices = @transform_0, window_bounds = array<i64: 8, 128>}, {pipeline_mode = #tpu.pipeline_mode<synchronous>, transform_indices = @transform_1, window_bounds = array<i64: 4, 8>}, {pipeline_mode = #tpu.pipeline_mode<synchronous>, transform_indices = @transform_2, window_bounds = array<i64: 1, 8>}, {pipeline_mode = #tpu.pipeline_mode<synchronous>, transform_indices = @transform_3, window_bounds = array<i64: 8, 128>}, {pipeline_mode = #tpu.pipeline_mode<synchronous>, transform_indices = @transform_4, window_bounds = array<i64: 1, 128>}, {transform_indices = @transform_5, window_bounds = array<i64: 2, 128>}]} {
    %c0_i32 = arith.constant 0 : i32
    %0 = arith.cmpi eq, %arg1, %c0_i32 : i32
    %1 = arith.extui %0 : i1 to i32
    %c0_i32_0 = arith.constant 0 : i32
    %2 = arith.cmpi ne, %1, %c0_i32_0 : i32
    scf.if %2 {
      %cst_7 = arith.constant 0.000000e+00 : f32
      %12 = vector.broadcast %cst_7 : f32 to vector<8x1xf32>
      %c0_8 = arith.constant 0 : index
      %c0_9 = arith.constant 0 : index
      %13 = vector.load %arg8[%c0_8, %c0_9] : memref<8x1xf32, #tpu.memory_space<vmem>>, vector<8x1xf32>
      tpu.vector_store %arg8[%c0_8, %c0_9], %12 {strides = array<i32>} : memref<8x1xf32, #tpu.memory_space<vmem>>, vector<8x1xf32>,
    } else {
    }
    %c0 = arith.constant 0 : index
    %c0_1 = arith.constant 0 : index
    %3 = vector.load %arg2[%c0, %c0_1] : memref<8x128xf32, #tpu.memory_space<vmem>>, vector<8x128xf32>
    %c0_2 = arith.constant 0 : index
    %c0_3 = arith.constant 0 : index
    %4 = vector.load %arg8[%c0_2, %c0_3] : memref<8x1xf32, #tpu.memory_space<vmem>>, vector<8x1xf32>
    %cst = arith.constant dense<0.000000e+00> : vector<8xf32>
    %5 = vector.multi_reduction <add>, %3, %cst [1] : vector<8x128xf32> to vector<8xf32>
    %6 = vector.shape_cast %5 : vector<8xf32> to vector<8x1xf32>
    %7 = arith.addf %4, %6 : vector<8x1xf32>
    %c0_4 = arith.constant 0 : index
    %c0_5 = arith.constant 0 : index
    %8 = vector.load %arg8[%c0_4, %c0_5] : memref<8x1xf32, #tpu.memory_space<vmem>>, vector<8x1xf32>
    tpu.vector_store %arg8[%c0_4, %c0_5], %7 {strides = array<i32>} : memref<8x1xf32, #tpu.memory_space<vmem>>, vector<8x1xf32>,
    %c1_i32 = arith.constant 1 : i32
    %9 = arith.cmpi eq, %arg1, %c1_i32 : i32
    %10 = arith.extui %9 : i1 to i32
    %c0_i32_6 = arith.constant 0 : i32
    %11 = arith.cmpi ne, %10, %c0_i32_6 : i32
    scf.if %11 {
      %c0_7 = arith.constant 0 : index
      %c0_8 = arith.constant 0 : index
      %12 = vector.load %arg8[%c0_7, %c0_8] : memref<8x1xf32, #tpu.memory_space<vmem>>, vector<8x1xf32>
      %13 = vector.shape_cast %12 : vector<8x1xf32> to vector<2x4xf32>
      %cst_9 = arith.constant 3.906250e-03 : f32
      %14 = vector.broadcast %cst_9 : f32 to vector<2x4xf32>
      %15 = arith.mulf %13, %14 : vector<2x4xf32>
      %c0_10 = arith.constant 0 : index
      %c0_11 = arith.constant 0 : index
      %16 = vector.load %arg3[%c0_10, %c0_11] : memref<4x8xf32, #tpu.memory_space<vmem>>, vector<4x8xf32>
      %cst_12 = arith.constant dense<0.000000e+00> : vector<2x8xf32>
      %17 = tpu.matmul %15, %16, %cst_12 {dimension_numbers = #tpu.dot_dimension_numbers<[1], [0], [0], [1], [0, 0, 1, 1], [], []>} : vector<2x4xf32>, vector<4x8xf32>, vector<2x8xf32> -> vector<2x8xf32>
      %c0_13 = arith.constant 0 : index
      %c0_14 = arith.constant 0 : index
      %18 = vector.load %arg4[%c0_13, %c0_14] : memref<1x8xf32, #tpu.memory_space<vmem>>, vector<1x8xf32>
      %19 = vector.broadcast %18 : vector<1x8xf32> to vector<2x8xf32>
      %20 = arith.addf %17, %19 : vector<2x8xf32>
      %cst_15 = arith.constant 0.000000e+00 : f32
      %21 = vector.broadcast %cst_15 : f32 to vector<2x8xf32>
      %22 = arith.maximumf %20, %21 : vector<2x8xf32>
      %c0_16 = arith.constant 0 : index
      %c0_17 = arith.constant 0 : index
      %23 = vector.load %arg5[%c0_16, %c0_17] : memref<8x128xf32, #tpu.memory_space<vmem>>, vector<8x128xf32>
      %cst_18 = arith.constant dense<0.000000e+00> : vector<2x128xf32>
      %24 = tpu.matmul %22, %23, %cst_18 {dimension_numbers = #tpu.dot_dimension_numbers<[1], [0], [0], [1], [0, 0, 1, 1], [], []>} : vector<2x8xf32>, vector<8x128xf32>, vector<2x128xf32> -> vector<2x128xf32>
      %c0_19 = arith.constant 0 : index
      %c0_20 = arith.constant 0 : index
      %25 = vector.load %arg6[%c0_19, %c0_20] : memref<1x128xf32, #tpu.memory_space<vmem>>, vector<1x128xf32>
      %26 = vector.broadcast %25 : vector<1x128xf32> to vector<2x128xf32>
      %27 = arith.addf %24, %26 : vector<2x128xf32>
      %28 = arith.negf %27 : vector<2x128xf32>
      %29 = math.exp %28 : vector<2x128xf32>
      %cst_21 = arith.constant 1.000000e+00 : f32
      %30 = vector.broadcast %cst_21 : f32 to vector<2x128xf32>
      %31 = arith.addf %30, %29 : vector<2x128xf32>
      %32 = arith.divf %30, %31 : vector<2x128xf32>
      %c0_22 = arith.constant 0 : index
      %c0_23 = arith.constant 0 : index
      %33 = vector.load %arg7[%c0_22, %c0_23] : memref<2x128xf32, #tpu.memory_space<vmem>>, vector<2x128xf32>
      tpu.vector_store %arg7[%c0_22, %c0_23], %32 {strides = array<i32>} : memref<2x128xf32, #tpu.memory_space<vmem>>, vector<2x128xf32>,
    } else {
    }
    return
  }
  func.func @transform_0(%arg0: i32, %arg1: i32) -> (i32, i32) {
    %c0_i32 = arith.constant 0 : i32
    return %arg0, %arg1 : i32, i32
  }
  func.func @transform_1(%arg0: i32, %arg1: i32) -> (i32, i32) {
    %c0_i32 = arith.constant 0 : i32
    %c0_i32_0 = arith.constant 0 : i32
    %c0_i32_1 = arith.constant 0 : i32
    return %c0_i32, %c0_i32_0 : i32, i32
  }
  func.func @transform_2(%arg0: i32, %arg1: i32) -> (i32, i32) {
    %c0_i32 = arith.constant 0 : i32
    %c0_i32_0 = arith.constant 0 : i32
    %c0_i32_1 = arith.constant 0 : i32
    return %c0_i32, %c0_i32_0 : i32, i32
  }
  func.func @transform_3(%arg0: i32, %arg1: i32) -> (i32, i32) {
    %c0_i32 = arith.constant 0 : i32
    %c0_i32_0 = arith.constant 0 : i32
    %c0_i32_1 = arith.constant 0 : i32
    return %c0_i32, %c0_i32_0 : i32, i32
  }
  func.func @transform_4(%arg0: i32, %arg1: i32) -> (i32, i32) {
    %c0_i32 = arith.constant 0 : i32
    %c0_i32_0 = arith.constant 0 : i32
    %c0_i32_1 = arith.constant 0 : i32
    return %c0_i32, %c0_i32_0 : i32, i32
  }
  func.func @transform_5(%arg0: i32, %arg1: i32) -> (i32, i32) {
    %c0_i32 = arith.constant 0 : i32
    %c0_i32_0 = arith.constant 0 : i32
    return %arg0, %c0_i32 : i32, i32
  }
}

</mosaic_0001>

<bundles_post_ra>
// kernel: tpu_custom_call.1
= control target key start
LH: loop header
LB: loop body
LE: loop exit
PB: predicated region body
PF: predicated region fallthrough
CT: control target
= control target key end

     0   :  { %10 = vsyncpa [#allocation4], 0  ;;  %s949_s0 = inlined_call_operand.hbm [shape: f32[8,256], index: 0, kind: input, shape index: {}]   ;;  %s950_s1 = inlined_call_operand.hbm [shape: f32[4,8], index: 1, kind: input, shape index: {}]   ;;  %s951_s2 = inlined_call_operand.vmem [shape: f32[1,8], index: 2, kind: input, shape index: {}]   ;;  %s952_s3 = inlined_call_operand.hbm [shape: f32[8,128], index: 3, kind: input, shape index: {}]   ;;  %s953_s4 = inlined_call_operand.vmem [shape: f32[1,128], index: 4, kind: input, shape index: {}]   ;;  %s954_s5 = inlined_call_operand.hbm [shape: f32[2,128], index: 5, kind: output, shape index: {}]  }
   0x1   :  { %12 = vsyncpa [#allocation4 + $0x1], 0 }
   0x2   :  { %13 = vsyncpa [#allocation7], 0 }
   0x3   :  { %14 = vsyncpa [#allocation5], 0  ;;  %s823_s18 = smov 0   ;;  %s825_s19 = smov 0  }
   0x4   :  { %s827_s20 = smov 0   ;;  %s829_s21 = smov 0  }
   0x5   :  { %s831_s22 = smov 0   ;;  %s833_s23 = smov 0  }
   0x6 LB: > { %s497_s24 = sadd.s32 4294967295, %s786_s23   ;;  %p54_p0 = scmp.ne.s32.totalorder %s770_s19, %s766_s18  ;;  %s786_s23 = sphi %s833_s23, %s20_s23   ;;  %s782_s22 = sphi %s831_s22, %s963_s22   ;;  %s778_s21 = sphi %s829_s21, %s962_s21   ;;  %s774_s20 = sphi %s827_s20, %s961_s20   ;;  %s770_s19 = sphi %s825_s19, %s960_s19   ;;  %s766_s18 = sphi %s823_s18, %s959_s18  }
   0x7   : > { %p855_p1 = scmp.eq.s32.totalorder %s497_s24, 0  ;;  %p498_p2 = scmp.ge.s32.totalorder %s786_s23, 1 }
   0x8   : > { %p175_p3 = scmp.lt.s32.totalorder %s786_s23, 3  ;;  %s187_s29 = sshll.u32 %s950_s1, 4  ;;  %s188_s29 = int_to_ptr.hbm [resolvable:$true] %s187_s29 }
   0x9   : > { %p863_p4 = por %p855_p1, %p54_p0  ;;  %s788_s6 = smov [#allocation6]  }
   0xa   : > { %p870_p5 = pnand %p498_p2, %p175_p3  ;;  %s189_s7 = sshll.u32 %s788_s6, 4  ;;  %s190_s7 = int_to_ptr.vmem [resolvable:$true] %s189_s7 }
   0xb   : > { %s202_s10 = sshll.u32 %s952_s3, 4  ;;  %s789_s11 = smov [#allocation8]   ;;  %s203_s10 = int_to_ptr.hbm [resolvable:$true] %s202_s10 }
   0xc   : > { %p532_p6 = pneg %p870_p5  ;;  %s204_s12 = sshll.u32 %s789_s11, 4  ;;  %s205_s12 = int_to_ptr.vmem [resolvable:$true] %s204_s12 }
   0xd   : > { %s29_s13 = sadd.s32 1, %s782_s22  ;;  %s41_s14 = sadd.s32 1, %s774_s20 }
   0xe   : > { %p533_p7 = pnand %p532_p6, %p855_p1  ;;  %p30_p8 = scmp.ge.s32.totalorder %s29_s13, 2 }
   0xf   : > { %p48_p9 = scmp.ne.s32.totalorder %s774_s20, %s770_s19  ;;  %p49_p10 = scmp.eq.s32.totalorder %s786_s23, 0 }
  0x10   : > { %535 = dma.hbm_to_vmem [thread:$0]  (!%p533_p7), %s188_s29, 64, %s190_s7, [#allocation7]  }
  0x11   : > { %538 = dma.hbm_to_vmem [thread:$0]  (!%p533_p7), %s203_s10, 128, %s205_s12, [#allocation7]  }
  0x12   : > { %p545_p11 = scmp.lt.s32.totalorder %s786_s23, 2  ;;  %s965_s13 = smov (%p30_p8, %s29_s13), 0 }
  0x13   : > { %p889_p12 = por %p49_p10, %p48_p9  ;;  %s218_s16 = sand.u32 1, %s774_s20  }
  0x14   : > { %s37_s17 = ssub.s32 %s782_s22, %s965_s13  ;;  %s502_s18 = sshll.u32 %s218_s16, 3 }
  0x15   : > { %p39_p13 = scmp.eq.s32.totalorder %s37_s17, 0  ;;  %s503_s27 = sshll.u32 %s782_s22, 3 }
  0x16   : > { %s228_s7 = scalar_lea.hbm %s949_s0, %s503_s27  ;;  %s222_s8 = scalar_lea.vmem [#allocation3], %s502_s18 }
  0x17   : > { %s898_s28 = scalar_select %p39_p13, %s774_s20, %s41_s14  }
  0x18   : > { %s232_s9 = sshll.u32 %s222_s8, 4  ;;  %s230_s10 = sshll.u32 %s228_s7, 4  ;;  %s233_s9 = int_to_ptr.vmem [resolvable:$true] %s232_s9  ;;  %s231_s10 = int_to_ptr.hbm [resolvable:$true] %s230_s10 }
  0x19   : > { %p540_p0 = pnand %p545_p11, %p889_p12  ;;  %s219_s11 = scalar_lea.sflag [#allocation4], %s218_s16 }
  0x1a   : > { %241 = sbr.rel (%p870_p5) target bundleno = 599 (0x257), region = 40  ;;  %s243_s12 = sand.u32 (!%p870_p5), 1, %s770_s19  }
  0x1b   : > { %542 = dma.hbm_to_vmem [thread:$0]  (!%p540_p0), %s231_s10, 128, %s233_s9, %s219_s11  }
  0x1c   : > { %s505_s14 = sshll.u32 (!%p870_p5), %s243_s12, 3  ;;  %s244_s17 = scalar_lea.sflag (!%p870_p5), [#allocation4], %s243_s12 }
  0x1d   : > { %s247_s29 = scalar_lea.vmem (!%p870_p5), [#allocation3], %s505_s14 }
  0x1f   : > { %753 = dma.done.wait (%p863_p4), %s244_s17, 128  }
  0x20   : > { %755 = vsyncadd (%p863_p4), %s244_s17, 4294967168 }
  0x21   : > { %757 = dma.done.wait (%p855_p1), [#allocation7], 192  }
  0x22   : > { %759 = vsyncadd (%p855_p1), [#allocation7], 4294967104  ;;  %p508_p2 = scmp.ne.s32.totalorder %s778_s21, 0 }
  0x24   : > { %283 = sbr.rel (%p508_p2) target bundleno = 43 (0x2b), region = 56 }
  0x29   : > { %vm284_vm0 = vcmask 7168   ;;  %v790_v0 = vmov 0.0  }
  0x2a   : > { %285 = vst.msk [vmem:[#allocation2] sm:$0xff] %vm284_vm0, %v790_v0 }
  0x2b PF: > { %v286_v1 = vld [vmem:[%s247_s29] sm:$0xff]  ;;  %vm291_vm1 = vcmask 7168   ;;  %p509_p3 = scmp.ne.s32.totalorder %s778_s21, 1 }
  0x2c   : > { %288 = vadd.xlane.f32.xlu0 %v286_v1 }
  0x31   : > { %v287_v2 = vld [vmem:[#allocation2] sm:$0xff] }
  0x9e   : > { %296 = sbr.rel (%p509_p3) target bundleno = 593 (0x251), region = 60 }
  0x9f   : > { %v289_v3 = vpop.xlane.xlu0 %288 }
  0xa0   : > { %v290_v4 = vadd.f32 %v289_v3, %v287_v2 }
  0xa2   : > { %292 = vst.msk [vmem:[#allocation2] sm:$0xff] %vm291_vm1, %v290_v4 }
  0xa3   : > { %v791_v6 = vmov 0   ;;  %v303_v12 = vld [vmem:[#allocation6] sm:$0xf]  ;;  %vm330_vm2 = vcmask 1043456   ;;  %v321_v14 = vlaneseq  ;;  %vm325_vm3 = vcmask 1041409   ;;  %v355_v20 = vld [vmem:[#allocation8] sm:$0xff] }
  0xa4   : > { %603 = vset.pattern.permute.xlu0 %v791_v6  ;;  %510 = vmatpush.msk.msra.mxu0 %vm330_vm2, %v303_v12  ;;  %vm327_vm4 = vcmask 31744   ;;  %v604_v21 = vld [vmem:[%s951_s2] ss:$0 sm:$0xff]  ;;  %vm360_vm5 = vcmask 64512  }
  0xa5   : > { %v322_v15 = vand.u32 127, %v321_v14  ;;  %379 = vmatpush.msra.mxu1 %v355_v20  ;;  %v605_v25 = vld [vmem:[%s953_s4] ss:$0 sm:$0xff] }
  0xa9   : > { %v297_v5 = vld [vmem:[#allocation2] sm:$0xff] }
  0xaa   : > { %v301_v7 = vmul.f32 0.00390625, %v297_v5  ;;  %v299_v8 = vrot.slane %v297_v5, 4 }
  0xac   : > { %310 = vst [vmem:[#allocation1] ss:$2 sm:$0xff] %v301_v7  ;;  %v302_v9 = vmul.f32 0.00390625, %v299_v8 }
  0xae   : > { %313 = vst [vmem:[#allocation1 + $0x10] ss:$2 sm:$0xff] %v302_v9 }
  0xb3   : > { %v311_v10 = vld.sshfl [vmem:[#allocation1] sm:$0xff pattern:$0x75316420] }
  0xb4   : > { %316 = vperm.xlu0 %603, %v311_v10  }
  0xb5   : > { %v314_v11 = vld.sshfl [vmem:[#allocation1 + $0x10] sm:$0xff pattern:$0x75316420] }
  0xbc   : > { %319 = vperm.xlu0 %603, %v314_v11  }
 0x126   : > { %v317_v13 = vpop.permute.xlu0 %316 }
 0x127   : > { %v323_v17 = vperm.slane %v317_v13, %v322_v15 }
 0x12e   : > { %v320_v16 = vpop.permute.xlu0 %319 }
 0x12f   : > { %v324_v18 = vperm.slane %v320_v16, %v322_v15 }
 0x131   : > { %v326_v19 = vsel %vm325_vm3, %v324_v18, %v323_v17 }
 0x132   : > { %511 = vmatmul.msk.f32.vlgmr.msra.gmra.mxu0 %vm327_vm4, %v326_v19 }
 0x1af   : > { %v351_v22 = vpop.f32.mrf.mxu0 }
 0x1b0   : > { %v352_v23 = vadd.f32 %v604_v21, %v351_v22 }
 0x1b2   : > { %v354_v24 = vmax.f32 %v352_v23, 0.0 }
 0x1b4   : > { %512 = vmatmul.msk.f32.vlgmr.msra.gmra.mxu1 %vm360_vm5, %v354_v24 }
 0x231   : > { %v381_v26 = vpop.f32.mrf.mxu1 }
 0x232   : > { %v382_v27 = vadd.f32 %v605_v25, %v381_v26 }
 0x234   : > { %v513_v28 = vmul.f32 -1.442695, %v382_v27 }
 0x236   : > { %606 = vpow2.f32 %v513_v28 }
 0x23c   : > { %v607_v29 = vpop.eup %606 }
 0x23d   : > { %v387_v30 = vadd.f32 1.0, %v607_v29 }
 0x23f   : > { %608 = vrcp.f32 %v387_v30  ;;  %v399_v34 = vand.u32 2147483648, %v387_v30  ;;  %v397_v36 = vand.u32 2147483647, %v387_v30  ;;  %vm393_vm7 = vweird.f32 %v387_v30 }
 0x241   : > { %v400_v38 = vor.u32 1.1754944e-38, %v399_v34  ;;  %vm398_vm9 = vcmp.eq.f32.partialorder %v397_v36, 8.507059e+37 }
 0x245   : > { %v609_v31 = vpop.eup %608 }
 0x246   : > { %v389_v32 = vmul.f32 %v609_v31, %v387_v30  ;;  %vm394_vm6 = vweird.f32 %v609_v31 }
 0x247   : > { %vm395_vm8 = vmor %vm393_vm7, %vm394_vm6 }
 0x248   : > { %v390_v33 = vsub.f32 1.0, %v389_v32 }
 0x24a   : > { %v391_v35 = vmul.f32 %v609_v31, %v390_v33 }
 0x24c   : > { %v392_v37 = vadd.f32 %v609_v31, %v391_v35 }
 0x24e   : > { %v396_v39 = vsel %vm395_vm8, %v609_v31, %v392_v37 }
 0x24f   : > { %v401_v40 = vsel %vm398_vm9, %v400_v38, %v396_v39 }
 0x250   : > { %403 = vst [vmem:[#allocation9] sm:$0x3] %v401_v40 }
 0x251 PF: > { %p548_p1 = scmp.eq.s32.totalorder %s497_s24, 1  ;;  %s414_s18 = sshll.u32 %s954_s5, 4  ;;  %s415_s18 = int_to_ptr.hbm [resolvable:$true] %s414_s18 }
 0x252   : > { %s792_s27 = smov [#allocation9]  }
 0x253   : > { %s412_s6 = sshll.u32 %s792_s27, 4  ;;  %s413_s6 = int_to_ptr.vmem [resolvable:$true] %s412_s6 }
 0x254   : > { %529 = dma.vmem_to_hbm [thread:$0]  (%p548_p1), %s413_s6, 32, %s415_s18, [#allocation5]  }
 0x255   : > { %761 = dma.done.wait (%p548_p1), [#allocation5], 32  }
 0x256   : > { %763 = vsyncadd (%p548_p1), [#allocation5], 4294967264 }
 0x257 PF: > { %s20_s23 = sadd.s32 1, %s786_s23   ;;  %s959_s18 = smov %s770_s19 }
 0x258   : > { %p17_p4 = scmp.ge.s32.totalorder %s20_s23, 4   ;;  %s960_s19 = smov %s774_s20 }
 0x259   : > { %s961_s20 = smov %s898_s28  ;;  %s962_s21 = smov %s782_s22 }
 0x25a   : > { %s963_s22 = smov %s965_s13  ;;  %19 = sbr.rel (!%p17_p4) target bundleno = 6 (0x6), region = 95 }
 0x25f   :  { %428 = vsyncpa [#allocation4], 1 }
 0x260   :  { %430 = vsyncpa [#allocation4 + $0x1], 1 }
 0x261   :  { %431 = vsyncpa [#allocation7], 1 }
 0x262   :  { %432 = vsyncpa [#allocation5], 1 }
 0x263   :  { %434 = vsyncpa [#allocation5 + $0x1], 1 }

</bundles_post_ra>
